<compile_context>
chip_gen: v6e
topology: v6e:2x2x1
jax: 0.10.0
libtpu: 0.0.40
codegen_flags: <defaults>
</compile_context>

<pallas_src>
import functools
import numpy as np
import jax
import jax.numpy as jnp
from jax.experimental import pallas as pl
from jax.experimental.pallas import tpu as pltpu


def _round_up(x, m):
    return (x + m - 1) // m * m


def make_scatter_matrix(dim: int) -> np.ndarray:
    """(tril_size, dim*dim) 0/1 matrix mapping packed tril params to a flat
    row-major (dim, dim) matrix (lower triangle filled, upper = 0)."""
    # TODO(synk): for dim >= ~32 this O(dim^4) constant gets VMEM-heavy;
    # replace with a VPU iota/compare-based tril expansion instead of an MXU
    # scatter.
    tril_size = dim * (dim + 1) // 2
    rows, cols = np.tril_indices(dim)
    sc = np.zeros((tril_size, dim * dim), dtype=np.float32)
    sc[np.arange(tril_size), rows * dim + cols] = 1.0
    return sc


# ----------------------------------------------------------------------------
# Fold kernel: expand packed tril rows to full (dim*dim) rows + clamp diagonal.
# Runs once per weight table, tiled over vocab.
# ----------------------------------------------------------------------------
def _fold_kernel(w_ref, scatter_ref, o_ref, *, dim):
    # w_ref: (v_blk, tril_size), scatter_ref: (tril_size, dim*dim)
    full = jnp.dot(w_ref[...], scatter_ref[...],
                   preferred_element_type=jnp.float32,
                   precision=jax.lax.Precision.HIGHEST)   # exact: 0/1 scatter
    lane = jax.lax.broadcasted_iota(jnp.int32, full.shape, 1)
    is_diag = (lane % (dim + 1)) == 0      # exact for a single dim*dim segment
    o_ref[...] = jnp.where(is_diag, jnp.maximum(full, 1e-4), full)


def fold_embedding_table(weights, dim, pack):
    """-> (pack*vocab, pack*dim*dim) block-diagonal, clamped, folded table.
    Call once per weight table (e.g. once per training step / once for
    inference) and reuse across forward calls."""
    vocab, tril_size = weights.shape
    mat = dim * dim
    scatter = jnp.asarray(make_scatter_matrix(dim))

    v_blk = min(vocab, 2048) if vocab % 8 == 0 else vocab
    w_full = pl.pallas_call(
        functools.partial(_fold_kernel, dim=dim),
        out_shape=jax.ShapeDtypeStruct((vocab, mat), jnp.float32),
        grid=(pl.cdiv(vocab, v_blk),),
        in_specs=[
            pl.BlockSpec((v_blk, tril_size), lambda i: (i, 0)),
            pl.BlockSpec((tril_size, mat), lambda i: (0, 0)),
        ],
        out_specs=pl.BlockSpec((v_blk, mat), lambda i: (i, 0)),
        compiler_params=pltpu.CompilerParams(
            dimension_semantics=("parallel",)),
    )(weights.astype(jnp.float32), scatter)

    if pack == 1:
        return w_full
    # Block-diagonal packing (done once, outside the hot path) so the gather is
    # a single lane-dense 128-wide dot.  Off-diagonal blocks are exactly zero,
    # so the diag clamp above cannot leak across packed segments.
    packed = jnp.zeros((pack * vocab, pack * mat), jnp.float32)
    for p in range(pack):
        packed = packed.at[p * vocab:(p + 1) * vocab,
                           p * mat:(p + 1) * mat].set(w_full)
    return packed


# ----------------------------------------------------------------------------
# Gather kernel: one-hot @ folded-table, pack tokens per 128-lane output row.
# ----------------------------------------------------------------------------
def _gather_kernel(idx_ref, table_ref, o_ref, *, vocab, pack):
    # idx_ref:   (rows, pack)              int32, `pack` token ids per out row
    # table_ref: (pack*vocab, pack*mat)    f32, block-diagonal folded table
    # o_ref:     (rows, pack*mat)          f32, lane-dense output block
    idx = idx_ref[...]
    rows = idx.shape[0]
    kdim = pack * vocab
    col = jax.lax.broadcasted_iota(jnp.int32, (rows, kdim), 1)
    onehot = (col == idx[:, 0:1]).astype(jnp.float32)
    for p in range(1, pack):                 # static, fully unrolled (pack<=8)
        onehot = onehot + (col == (idx[:, p:p + 1] + p * vocab)).astype(
            jnp.float32)
    # One fused 128-wide dot; HIGHEST precision -> embeddings reproduced
    # exactly (one-hot selection, zero off-diagonal blocks).
    o_ref[...] = jnp.dot(onehot, table_ref[...],
                         preferred_element_type=jnp.float32,
                         precision=jax.lax.Precision.HIGHEST)


def gather_embeddings(indices, packed_table, dim, vocab, pack,
                      tokens_per_block=8192):
    B, S = indices.shape
    mat = dim * dim
    n_tokens = B * S

    # Minimal padding (to a multiple of `pack` only) -> usually no post-kernel
    # slice copy of the output.
    n_pad = _round_up(n_tokens, pack)
    idx_flat = indices.reshape(-1).astype(jnp.int32)
    if n_pad != n_tokens:
        idx_flat = jnp.pad(idx_flat, (0, n_pad - n_tokens))  # pad with id 0
    n_rows = n_pad // pack
    idx_packed = idx_flat.reshape(n_rows, pack)

    # Large blocks (~2 MiB of output per step) amortize the ~0.35 us/step grid
    # overhead; keep >= 2 grid blocks when there is enough work so the
    # "parallel" token axis shards across both v7x TensorCores.
    rows_target = max(8, _round_up(tokens_per_block // pack, 8))
    rows_blk = min(_round_up(n_rows, 8), rows_target)
    if n_rows >= 16 and rows_blk >= n_rows:
        rows_blk = _round_up(pl.cdiv(n_rows, 2), 8)
    n_blocks = pl.cdiv(n_rows, rows_blk)

    # TODO(synk): for large vocab (>~ a few hundred), single-buffer the
    # resident table and replace the one-hot matmul with a scalar-prefetch /
    # double-buffered make_async_copy row gather (O(1) per token, no
    # (rows, vocab) one-hot intermediate).
    out_packed = pl.pallas_call(
        functools.partial(_gather_kernel, vocab=vocab, pack=pack),
        out_shape=jax.ShapeDtypeStruct((n_rows, pack * mat), jnp.float32),
        grid=(n_blocks,),
        in_specs=[
            pl.BlockSpec((rows_blk, pack), lambda i: (i, 0)),
            pl.BlockSpec(packed_table.shape, lambda i: (0, 0)),  # resident
        ],
        out_specs=pl.BlockSpec((rows_blk, pack * mat), lambda i: (i, 0)),
        compiler_params=pltpu.CompilerParams(
            dimension_semantics=("parallel",)),
    )(idx_packed, packed_table)

    out = out_packed.reshape(n_pad, mat)
    if n_pad != n_tokens:           # only when B*S is not a multiple of `pack`
        out = out[:n_tokens]
    return out.reshape(B, S, dim, dim)


def density_matrix_embedding(indices, weights, dim, tokens_per_block=8192):
    """indices: (B, S) int32, weights: (vocab, tril_size) f32
    returns (B, S, dim, dim) f32."""
    vocab, tril_size = weights.shape
    mat = dim * dim
    assert tril_size == dim * (dim + 1) // 2
    pack = 128 // mat if (mat < 128 and 128 % mat == 0) else 1
    # Fold is O(vocab) and independent of the tokens; for inference with static
    # weights, call fold_embedding_table once and reuse the result.
    packed_table = fold_embedding_table(weights, dim, pack)
    return gather_embeddings(indices, packed_table, dim, vocab, pack,
                             tokens_per_block)


# ----------------------------------------------------------------------------
# Reference / init helpers
# ----------------------------------------------------------------------------
def init_weights(key, vocab_size, dim):
    """Deterministic re-implementation of DensityMatrixEmbedding._init_weights."""
    tril_size = dim * (dim + 1) // 2
    k_orth, k_noise = jax.random.split(key)
    w = jax.nn.initializers.orthogonal()(k_orth, (vocab_size, tril_size),
                                         jnp.float32) * 0.01
    diag_indices = np.array([i * (i + 1) // 2 + i for i in range(dim)])
    diag_vals = (jnp.linspace(0.1, 0.2, dim)
                 + jax.random.normal(k_noise, (dim,)) * 0.01)
    w = w.at[:, diag_indices].set(jnp.broadcast_to(diag_vals,
                                                   (vocab_size, dim)))
    return w


def reference_forward(indices, weights, dim):
    """Pure-JAX reference mirroring the PyTorch forward."""
    B, S = indices.shape
    tril = weights[indices.reshape(-1)]  # (N, tril_size)
    N = tril.shape[0]
    rows, cols = np.tril_indices(dim)
    L = jnp.zeros((N, dim, dim), jnp.float32).at[:, rows, cols].set(tril)
    d = np.arange(dim)
    diag = jnp.maximum(L[:, d, d], 1e-4)
    L = L.at[:, d, d].set(diag)
    return L.reshape(B, S, dim, dim)


if __name__ == "__main__":
    vocab_size = 32
    dim = 8
    B, S = 2, 8     # 16 tokens -> multiple of pack=2, no padding / no slice

    key = jax.random.PRNGKey(0)
    k_w, k_idx = jax.random.split(key)
    weights = init_weights(k_w, vocab_size, dim)
    indices = jax.random.randint(k_idx, (B, S), 0, vocab_size, dtype=jnp.int32)

    out = density_matrix_embedding(indices, weights, dim)
    out = jax.block_until_ready(out)

    ref = reference_forward(indices, weights, dim)
    np.testing.assert_allclose(np.asarray(out), np.asarray(ref),
                               rtol=1e-5, atol=1e-6)

    assert out.shape == (B, S, dim, dim)
    print("KERNEL_OK")
</pallas_src>

<mosaic_0001>
module attributes {stable_mosaic.version = 11 : i64} {
  func.func @_fold_kernel(%arg0: i32, %arg1: memref<32x36xf32, #tpu.memory_space<vmem>>, %arg2: memref<36x64xf32, #tpu.memory_space<vmem>>, %arg3: memref<32x64xf32, #tpu.memory_space<vmem>>) attributes {dimension_semantics = [#tpu.dimension_semantics<parallel>], iteration_bounds = array<i64: 1>, scalar_prefetch = 0 : i64, scratch_operands = 0 : i64, tpu.core_type = #tpu.core_type<tc>, window_params = [{transform_indices = @transform_0, window_bounds = array<i64: 32, 36>}, {pipeline_mode = #tpu.pipeline_mode<synchronous>, transform_indices = @transform_1, window_bounds = array<i64: 36, 64>}, {transform_indices = @transform_2, window_bounds = array<i64: 32, 64>}]} {
    %c0 = arith.constant 0 : index
    %c0_0 = arith.constant 0 : index
    %0 = vector.load %arg1[%c0, %c0_0] : memref<32x36xf32, #tpu.memory_space<vmem>>, vector<32x36xf32>
    %c0_1 = arith.constant 0 : index
    %c0_2 = arith.constant 0 : index
    %1 = vector.load %arg2[%c0_1, %c0_2] : memref<36x64xf32, #tpu.memory_space<vmem>>, vector<36x64xf32>
    %cst = arith.constant dense<0.000000e+00> : vector<32x64xf32>
    %2 = tpu.matmul %0, %1, %cst {dimension_numbers = #tpu.dot_dimension_numbers<[1], [0], [0], [1], [0, 0, 1, 1], [], []>, precision = #tpu.contract_precision<fp32>} : vector<32x36xf32>, vector<36x64xf32>, vector<32x64xf32> -> vector<32x64xf32>
    %3 = tpu.iota {dimensions = array<i32: 1>} : vector<32x64xi32>
    %c9_i32 = arith.constant 9 : i32
    %c0_i32 = arith.constant 0 : i32
    %4 = arith.cmpi eq, %c9_i32, %c0_i32 : i32
    %c1_i32 = arith.constant 1 : i32
    %5 = arith.select %4, %c1_i32, %c9_i32 : i32
    %6 = vector.broadcast %5 : i32 to vector<32x64xi32>
    %7 = arith.remsi %3, %6 : vector<32x64xi32>
    %c0_i32_3 = arith.constant 0 : i32
    %8 = vector.broadcast %c0_i32_3 : i32 to vector<32x64xi32>
    %9 = arith.cmpi ne, %7, %8 : vector<32x64xi32>
    %c0_i32_4 = arith.constant 0 : i32
    %10 = vector.broadcast %c0_i32_4 : i32 to vector<32x64xi32>
    %11 = arith.cmpi slt, %7, %10 : vector<32x64xi32>
    %c0_i32_5 = arith.constant 0 : i32
    %12 = arith.cmpi slt, %5, %c0_i32_5 : i32
    %13 = vector.broadcast %12 : i1 to vector<32x64xi1>
    %14 = vector.broadcast %13 : vector<32x64xi1> to vector<32x64xi1>
    %15 = arith.xori %11, %14 : vector<32x64xi1>
    %16 = arith.andi %15, %9 : vector<32x64xi1>
    %17 = vector.broadcast %5 : i32 to vector<32x64xi32>
    %18 = arith.addi %7, %17 : vector<32x64xi32>
    %19 = arith.select %16, %18, %7 : vector<32x64xi1>, vector<32x64xi32>
    %c0_i32_6 = arith.constant 0 : i32
    %20 = vector.broadcast %c0_i32_6 : i32 to vector<32x64xi32>
    %21 = arith.cmpi eq, %19, %20 : vector<32x64xi32>
    %cst_7 = arith.constant 9.99999974E-5 : f32
    %22 = vector.broadcast %cst_7 : f32 to vector<32x64xf32>
    %23 = arith.maximumf %2, %22 : vector<32x64xf32>
    %24 = arith.select %21, %23, %2 : vector<32x64xi1>, vector<32x64xf32>
    %c0_8 = arith.constant 0 : index
    %c0_9 = arith.constant 0 : index
    %25 = vector.load %arg3[%c0_8, %c0_9] : memref<32x64xf32, #tpu.memory_space<vmem>>, vector<32x64xf32>
    tpu.vector_store %arg3[%c0_8, %c0_9], %24 {strides = array<i32>} : memref<32x64xf32, #tpu.memory_space<vmem>>, vector<32x64xf32>,
    return
  }
  func.func @transform_0(%arg0: i32) -> (i32, i32) {
    %c0_i32 = arith.constant 0 : i32
    %c0_i32_0 = arith.constant 0 : i32
    return %arg0, %c0_i32 : i32, i32
  }
  func.func @transform_1(%arg0: i32) -> (i32, i32) {
    %c0_i32 = arith.constant 0 : i32
    %c0_i32_0 = arith.constant 0 : i32
    %c0_i32_1 = arith.constant 0 : i32
    return %c0_i32, %c0_i32_0 : i32, i32
  }
  func.func @transform_2(%arg0: i32) -> (i32, i32) {
    %c0_i32 = arith.constant 0 : i32
    %c0_i32_0 = arith.constant 0 : i32
    return %arg0, %c0_i32 : i32, i32
  }
}

</mosaic_0001>

<bundles_post_ra>
// kernel: tpu_custom_call.1
= control target key start
LH: loop header
LB: loop body
LE: loop exit
PB: predicated region body
PF: predicated region fallthrough
CT: control target
= control target key end

     0   :  { %7 = vsyncpa [#allocation3], 0  ;;  %s1171_s0 = inlined_call_operand.hbm [shape: f32[32,36], index: 0, kind: input, shape index: {}]   ;;  %s1172_s1 = inlined_call_operand.hbm [shape: f32[36,64], index: 1, kind: input, shape index: {}]   ;;  %s1173_s2 = inlined_call_operand.hbm [shape: f32[32,64], index: 2, kind: output, shape index: {}]  }
   0x1   :  { %8 = vsyncpa [#allocation6], 0 }
   0x2   :  { %9 = vsyncpa [#allocation4], 0  ;;  %s966_s9 = smov [#allocation2]  }
   0x3   :  { %s15_s10 = sshll.u32 %s966_s9, 4  ;;  %s16_s10 = int_to_ptr.vmem [resolvable:$true] %s15_s10 }
   0x4   :  { %s908_s11 = scalar_lea.vmem %s16_s10, 512  ;;  %p913_p1 = scmp.lt.s32.totalorder %s16_s10, %s16_s10 }
   0x5   :  { %p909_p0 = scmp.ne.s32.totalorder %s16_s10, %s908_s11  ;;  %p914_p2 = scmp.lt.s32.totalorder %s908_s11, %s908_s11 }
   0x7   :  { %p915_p3 = por %p914_p2, %p913_p1 }
   0x9   :  { %p916_p4 = pnand %p915_p3, %p909_p0 }
   0xb   :  { %919 = shalt.err (!%p916_p4)
}
   0xc   :  { %s967_s12 = smov 128   ;;  %s968_s13 = smov 8  }
   0xd   :  { %21 = dma.hbm_to_vmem [thread:$0]  %s1171_s0, 512, %s16_s10, [#allocation3], %s967_s12, %s967_s12, %s968_s13  }
   0xe   :  { %s969_s16 = smov [#allocation5]  }
   0xf   :  { %s27_s17 = sshll.u32 %s969_s16, 4  ;;  %s28_s17 = int_to_ptr.vmem [resolvable:$true] %s27_s17 }
  0x10   :  { %s928_s18 = scalar_lea.vmem %s28_s17, 640  ;;  %p933_p6 = scmp.lt.s32.totalorder %s28_s17, %s28_s17 }
  0x11   :  { %p929_p5 = scmp.ne.s32.totalorder %s28_s17, %s928_s18  ;;  %p934_p7 = scmp.lt.s32.totalorder %s928_s18, %s928_s18 }
  0x13   :  { %p935_p8 = por %p934_p7, %p933_p6 }
  0x15   :  { %p936_p9 = pnand %p935_p8, %p929_p5 }
  0x17   :  { %939 = shalt.err (!%p936_p9)
}
  0x18   :  { %33 = dma.hbm_to_vmem [thread:$0]  %s1172_s1, 640, %s28_s17, [#allocation6], %s967_s12, %s967_s12, %s968_s13  }
  0x19   :  { %960 = dma.done.wait [#allocation3], 512  }
  0x1a   :  { %961 = vsyncadd [#allocation3], 4294966784 }
  0x1b   :  { %962 = dma.done.wait [#allocation6], 640  }
  0x1c   :  { %963 = vsyncadd [#allocation6], 4294966656  ;;  %vm62_vm0 = vcmask 1043456   ;;  %vm49_vm1 = vcmask 293888   ;;  %v48_v0 = vld [vmem:[#allocation5 + $0x20] sm:$0xf]  ;;  %v693_v59 = vlaneseq }
  0x1d   :  { %v47_v1 = vld [vmem:[#allocation5 + $0x18] sm:$0xff]  ;;  %v46_v2 = vld [vmem:[#allocation5 + $0x10] sm:$0xff]  ;;  %v64_v3 = vsel %vm62_vm0, %v48_v0, 0  ;;  %v45_v6 = vld [vmem:[#allocation5 + $0x8] sm:$0xff]  ;;  %vm720_vm6 = vcmask 523264   ;;  %s970_s0 = smov [#allocation7]  }
  0x1e   :  { %v998_v4 = vand.u32 4294901760, %v47_v1  ;;  %v1000_v5 = vand.u32 4294901760, %v46_v2  ;;  %v40_v7 = vld [vmem:[#allocation2] sm:$0xff]  ;;  %v1002_v8 = vand.u32 4294901760, %v64_v3  ;;  %v1004_v9 = vand.u32 4294901760, %v45_v6  ;;  %v41_v11 = vld [vmem:[#allocation2 + $0x8] sm:$0xff] }
  0x1f   :  { %v51_v10 = vsel %vm49_vm1, %v40_v7, 0  ;;  %v42_v12 = vld [vmem:[#allocation2 + $0x10] sm:$0xff]  ;;  %v44_v13 = vld [vmem:[#allocation5] sm:$0xff]  ;;  %v54_v16 = vsel %vm49_vm1, %v41_v11, 0  ;;  %v43_v18 = vld [vmem:[#allocation2 + $0x18] sm:$0xff]  ;;  %v694_v62 = vand.u32 127, %v693_v59 }
  0x20   :  { %v1007_v14 = vand.u32 4294901760, %v51_v10  ;;  %v1010_v15 = vsub.f32 %v47_v1, %v998_v4  ;;  %v1014_v17 = vsub.f32 %v46_v2, %v1000_v5  ;;  %797 = vmatprep.subr.mxu0 %v1002_v8  ;;  %v200_v19 = vsub.f32 %v64_v3, %v1002_v8  ;;  %s730_s1 = sshll.u32 %s970_s0, 4  ;;  %s731_s1 = int_to_ptr.vmem [resolvable:$true] %s730_s1 }
  0x21   :  { %v1018_v20 = vand.u32 4294901760, %v54_v16  ;;  %v1021_v21 = vsub.f32 %v45_v6, %v1004_v9  ;;  %v57_v22 = vsel %vm49_vm1, %v42_v12, 0  ;;  %798 = vmatpush3.msra.mxu0 %v1002_v8  ;;  %v1038_v27 = vand.u32 4294901760, %v44_v13  ;;  %s940_s21 = scalar_lea.vmem %s731_s1, 512  ;;  %p945_p11 = scmp.lt.s32.totalorder %s731_s1, %s731_s1 }
  0x22   :  { %v1026_v23 = vsub.f32 %v51_v10, %v1007_v14  ;;  %v1029_v24 = vand.u32 4294901760, %v1010_v15  ;;  %v1032_v25 = vand.u32 4294901760, %v1014_v17  ;;  %v1034_v26 = vand.u32 4294901760, %v57_v22  ;;  %823 = vmatprep.mubr.f32.mxu1 %v1007_v14  ;;  %799 = vmatprep.subr.mxu0 %v998_v4  ;;  %p941_p10 = scmp.ne.s32.totalorder %s731_s1, %s940_s21  ;;  %p946_p12 = scmp.lt.s32.totalorder %s940_s21, %s940_s21 }
  0x23   :  { %v1040_v28 = vand.u32 4294901760, %v200_v19  ;;  %v1043_v29 = vsub.f32 %v54_v16, %v1018_v20  ;;  %v60_v30 = vsel %vm49_vm1, %v43_v18, 0  ;;  %800 = vmatpush3.msra.mxu0 %v998_v4  ;;  %v1051_v33 = vand.u32 4294901760, %v1021_v21 }
  0x24   :  { %v138_v31 = vand.u32 4294901760, %v1026_v23  ;;  %v209_v32 = vsub.f32 %v1010_v15, %v1029_v24  ;;  %v1054_v34 = vsub.f32 %v57_v22, %v1034_v26  ;;  %801 = vmatprep.subr.mxu0 %v1000_v5  ;;  %v1059_v37 = vand.u32 4294901760, %v60_v30  ;;  %p947_p13 = por %p946_p12, %p945_p11 }
  0x25   :  { %v202_v35 = vsub.f32 %v200_v19, %v1040_v28  ;;  %v148_v36 = vand.u32 4294901760, %v1043_v29  ;;  %802 = vmatpush3.msra.mxu0 %v1000_v5  ;;  %v216_v39 = vsub.f32 %v1014_v17, %v1032_v25  ;;  %v223_v46 = vsub.f32 %v1021_v21, %v1051_v33 }
  0x26   :  { %v139_v38 = vsub.f32 %v1026_v23, %v138_v31  ;;  %v158_v40 = vand.u32 4294901760, %v1054_v34  ;;  %803 = vmatprep.subr.mxu0 %v1004_v9  ;;  %v210_v42 = vand.u32 4294901760, %v209_v32  ;;  %v1073_v44 = vsub.f32 %v60_v30, %v1059_v37  ;;  %p948_p0 = pnand %p947_p13, %p941_p10 }
  0x27   :  { %v203_v41 = vand.u32 4294901760, %v202_v35  ;;  %v149_v43 = vsub.f32 %v1043_v29, %v148_v36  ;;  %804 = vmatpush3.msra.mxu0 %v1004_v9  ;;  %v228_v47 = vsub.f32 %v44_v13, %v1038_v27  ;;  %v217_v51 = vand.u32 4294901760, %v216_v39 }
  0x28   :  { %v140_v45 = vand.u32 4294901760, %v139_v38  ;;  %805 = vmatprep.subr.mxu0 %v1038_v27  ;;  %v159_v49 = vsub.f32 %v1054_v34, %v158_v40  ;;  %v168_v50 = vand.u32 4294901760, %v1073_v44  ;;  %v224_v54 = vand.u32 4294901760, %v223_v46 }
  0x29   :  { %813 = vmatprep.subr.mxu1 %v203_v41  ;;  %v150_v48 = vand.u32 4294901760, %v149_v43  ;;  %806 = vmatpush3.msra.mxu0 %v1038_v27  ;;  %v229_v52 = vand.u32 4294901760, %v228_v47  ;;  %v1145_v0 = vmul.u32.u64.low 3817748708, %v694_v62  ;;  %v1146_v1 = vmul.u32.u64.high 3817748708, %v694_v62, %v1145_v0 }
  0x2a   :  { %814 = vmatpush3.msra.mxu1 %v203_v41  ;;  %807 = vmatprep.mubr.f32.mxu0 %v140_v45  ;;  %v169_v53 = vsub.f32 %v1073_v44, %v168_v50  ;;  %v160_v56 = vand.u32 4294901760, %v159_v49 }
  0x2b   :  { %815 = vmatprep.subr.mxu1 %v210_v42  ;;  %829 = vmatprep.subr.mxu0 %v200_v19  ;;  %v230_v55 = vsub.f32 %v228_v47, %v229_v52  ;;  %v701_v6 = vshrl.u32 %v1146_v1, 3 }
  0x2c   :  { %808 = vmatmul.mubr.f32.vlgmr.msra.gmra.mxu0 %v150_v48  ;;  %816 = vmatpush3.msra.mxu1 %v210_v42  ;;  %v170_v58 = vand.u32 4294901760, %v169_v53 }
  0x2d   :  { %830 = vmatpush3.msra.mxu0 %v200_v19  ;;  %817 = vmatprep.subr.mxu1 %v217_v51  ;;  %v231_v57 = vand.u32 4294901760, %v230_v55 }
  0x2e   :  { %831 = vmatprep.subr.mxu0 %v1010_v15  ;;  %818 = vmatpush3.msra.mxu1 %v217_v51 }
  0x2f   :  { %832 = vmatpush3.msra.mxu0 %v1010_v15  ;;  %819 = vmatprep.subr.mxu1 %v224_v54 }
  0x30   :  { %833 = vmatprep.subr.mxu0 %v1014_v17  ;;  %810 = vmatprep.mubr.f32.mxu0 %v160_v56 }
  0x31   :  { %820 = vmatpush3.msra.mxu1 %v224_v54  ;;  %834 = vmatpush3.msra.mxu0 %v1014_v17 }
  0x32   :  { %821 = vmatprep.subr.mxu1 %v231_v57  ;;  %811 = vmatmul.mubr.f32.gmra.mxu0 %v170_v58 }
  0x33   :  { %835 = vmatprep.subr.mxu0 %v1021_v21  ;;  %822 = vmatpush3.msra.mxu1 %v231_v57 }
  0x34   :  { %836 = vmatpush3.msra.mxu0 %v1021_v21  ;;  %824 = vmatmul.mubr.f32.vlgmr.msra.gmra.mxu1 %v1018_v20 }
  0x35   :  { %837 = vmatprep.subr.mxu0 %v228_v47  ;;  %845 = vmatprep.subr.mxu1 %v1002_v8 }
  0x36   :  { %838 = vmatpush3.msra.mxu0 %v228_v47  ;;  %839 = vmatprep.mubr.f32.mxu0 %v1026_v23 }
  0x37   :  { %846 = vmatpush3.msra.mxu1 %v1002_v8  ;;  %840 = vmatmul.mubr.f32.vlgmr.msra.gmra.mxu0 %v1043_v29 }
  0x38   :  { %847 = vmatprep.subr.mxu1 %v998_v4  ;;  %861 = vmatprep.subr.mxu0 %v1040_v28 }
  0x39   :  { %826 = vmatprep.mubr.f32.mxu1 %v1034_v26  ;;  %848 = vmatpush3.msra.mxu1 %v998_v4 }
  0x3a   :  { %862 = vmatpush3.msra.mxu0 %v1040_v28  ;;  %827 = vmatmul.mubr.f32.gmra.mxu1 %v1059_v37 }
  0x3b   :  { %849 = vmatprep.subr.mxu1 %v1000_v5  ;;  %863 = vmatprep.subr.mxu0 %v1029_v24 }
  0x3c   :  { %842 = vmatprep.mubr.f32.mxu0 %v1054_v34  ;;  %850 = vmatpush3.msra.mxu1 %v1000_v5 }
  0x3d   :  { %864 = vmatpush3.msra.mxu0 %v1029_v24  ;;  %851 = vmatprep.subr.mxu1 %v1004_v9 }
  0x3e   :  { %843 = vmatmul.mubr.f32.gmra.mxu0 %v1073_v44  ;;  %865 = vmatprep.subr.mxu0 %v1032_v25 }
  0x3f   :  { %852 = vmatpush3.msra.mxu1 %v1004_v9  ;;  %866 = vmatpush3.msra.mxu0 %v1032_v25 }
  0x40   :  { %853 = vmatprep.subr.mxu1 %v1038_v27  ;;  %867 = vmatprep.subr.mxu0 %v1051_v33 }
  0x41   :  { %854 = vmatpush3.msra.mxu1 %v1038_v27  ;;  %855 = vmatprep.mubr.f32.mxu1 %v138_v31 }
  0x42   :  { %868 = vmatpush3.msra.mxu0 %v1051_v33  ;;  %856 = vmatmul.mubr.f32.vlgmr.msra.gmra.mxu1 %v148_v36 }
  0x43   :  { %869 = vmatprep.subr.mxu0 %v229_v52  ;;  %877 = vmatprep.subr.mxu1 %v1002_v8 }
  0x44   :  { %870 = vmatpush3.msra.mxu0 %v229_v52  ;;  %871 = vmatprep.mubr.f32.mxu0 %v1007_v14 }
  0x45   :  { %878 = vmatpush3.msra.mxu1 %v1002_v8  ;;  %872 = vmatmul.mubr.f32.vlgmr.msra.gmra.mxu0 %v1018_v20 }
  0x46   :  { %879 = vmatprep.subr.mxu1 %v998_v4  ;;  %858 = vmatprep.mubr.f32.mxu1 %v158_v40 }
  0x47   :  { %880 = vmatpush3.msra.mxu1 %v998_v4  ;;  %874 = vmatprep.mubr.f32.mxu0 %v1034_v26 }
  0x48   :  { %859 = vmatmul.mubr.f32.gmra.mxu1 %v168_v50  ;;  %881 = vmatprep.subr.mxu1 %v1000_v5 }
  0x49   :  { %882 = vmatpush3.msra.mxu1 %v1000_v5  ;;  %875 = vmatmul.mubr.f32.gmra.mxu0 %v1059_v37 }
  0x4a   :  { %883 = vmatprep.subr.mxu1 %v1004_v9  ;;  %887 = vmatprep.mubr.f32.mxu1 %v1007_v14 }
  0x4b   :  { %884 = vmatpush3.msra.mxu1 %v1004_v9  ;;  %v702_v9 = vmul.u32 9, %v701_v6 }
  0x4c   :  { %885 = vmatprep.subr.mxu1 %v1038_v27 }
  0x4d   :  { %886 = vmatpush3.msra.mxu1 %v1038_v27  ;;  %v703_v14 = vsub.s32 %v694_v62, %v702_v9 }
  0x4e   :  { %888 = vmatmul.mubr.f32.vlgmr.msra.gmra.mxu1 %v1018_v20 }
  0x4f   :  { %890 = vmatprep.mubr.f32.mxu1 %v1034_v26  ;;  %vm706_vm2 = vcmp.ne.s32.totalorder %v703_v14, 0  ;;  %vm707_vm3 = vcmp.lt.s32.totalorder %v703_v14, 0  ;;  %v709_v26 = vadd.s32 9, %v703_v14 }
  0x50   :  { %vm708_vm4 = vmand %vm707_vm3, %vm706_vm2 }
  0x51   :  { %v710_v34 = vsel %vm708_vm4, %v709_v26, %v703_v14 }
  0x52   :  { %891 = vmatmul.mubr.f32.gmra.mxu1 %v1059_v37  ;;  %vm1149_vm5 = vcmp.eq.s32.totalorder %v710_v34, 0 }
  0xec   :  { %v809_v60 = vpop.f32.mrf.mxu0 }
  0xee   :  { %v142_v61 = vpop.f32.mrf.mxu0 }
  0xf2   :  { %v812_v63 = vpop.f32.mrf.mxu0 }
  0xf4   :  { %v162_v2 = vpop.f32.mrf.mxu0  ;;  %v825_v3 = vpop.f32.mrf.mxu1 }
  0xf5   :  { %v275_v12 = vadd.f32 %v825_v3, %v809_v60 }
  0xf6   :  { %v268_v5 = vpop.f32.mrf.mxu1 }
  0xf7   :  { %v841_v4 = vpop.f32.mrf.mxu0  ;;  %v269_v16 = vadd.f32 %v268_v5, %v142_v61 }
  0xf8   :  { %v376_v19 = vadd.f32 %v841_v4, %v275_v12 }
  0xf9   :  { %v368_v7 = vpop.f32.mrf.mxu0 }
  0xfa   :  { %v828_v8 = vpop.f32.mrf.mxu1  ;;  %v369_v23 = vadd.f32 %v368_v7, %v269_v16 }
  0xfb   :  { %v287_v20 = vadd.f32 %v828_v8, %v812_v63 }
  0xfc   :  { %v280_v11 = vpop.f32.mrf.mxu1 }
  0xfd   :  { %v281_v24 = vadd.f32 %v280_v11, %v162_v2 }
  0xfe   :  { %v844_v10 = vpop.f32.mrf.mxu0 }
  0xff   :  { %v390_v27 = vadd.f32 %v844_v10, %v287_v20 }
 0x100   :  { %v382_v15 = vpop.f32.mrf.mxu0 }
 0x101   :  { %v383_v31 = vadd.f32 %v382_v15, %v281_v24 }
 0x102   :  { %v857_v13 = vpop.f32.mrf.mxu1 }
 0x103   :  { %v476_v25 = vadd.f32 %v857_v13, %v376_v19 }
 0x104   :  { %v467_v17 = vpop.f32.mrf.mxu1 }
 0x105   :  { %v873_v18 = vpop.f32.mrf.mxu0  ;;  %v468_v28 = vadd.f32 %v467_v17, %v369_v23 }
 0x106   :  { %v584_v32 = vadd.f32 %v873_v18, %v476_v25 }
 0x107   :  { %v577_v22 = vpop.f32.mrf.mxu0 }
 0x108   :  { %v860_v21 = vpop.f32.mrf.mxu1  ;;  %v578_v36 = vadd.f32 %v577_v22, %v468_v28 }
 0x109   :  { %v876_v30 = vpop.f32.mrf.mxu0  ;;  %v492_v33 = vadd.f32 %v860_v21, %v390_v27 }
 0x10a   :  { %v483_v29 = vpop.f32.mrf.mxu1 }
 0x10b   :  { %v484_v37 = vadd.f32 %v483_v29, %v383_v31  ;;  %v589_v39 = vpop.f32.mrf.mxu0  ;;  %v596_v42 = vadd.f32 %v876_v30, %v492_v33 }
 0x10d   :  { %v590_v46 = vadd.f32 %v589_v39, %v484_v37 }
 0x10e   :  { %v889_v35 = vpop.f32.mrf.mxu1 }
 0x10f   :  { %v678_v38 = vadd.f32 %v889_v35, %v584_v32 }
 0x110   :  { %v671_v41 = vpop.f32.mrf.mxu1 }
 0x111   :  { %v713_v43 = vmax.f32 %v678_v38, 0.0001  ;;  %v672_v44 = vadd.f32 %v671_v41, %v578_v36 }
 0x112   :  { %v892_v45 = vpop.f32.mrf.mxu1 }
 0x113   :  { %v717_v47 = vsel %vm1149_vm5, %v713_v43, %v678_v38  ;;  %v712_v48 = vmax.f32 %v672_v44, 0.0001  ;;  %v690_v49 = vadd.f32 %v892_v45, %v596_v42 }
 0x114   :  { %722 = vst.msk [vmem:[#allocation7 + $0x8] sm:$0xff] %vm720_vm6, %v717_v47  ;;  %v683_v50 = vpop.f32.mrf.mxu1 }
 0x115   :  { %v716_v51 = vsel %vm1149_vm5, %v712_v48, %v672_v44  ;;  %v715_v52 = vmax.f32 %v690_v49, 0.0001  ;;  %v684_v53 = vadd.f32 %v683_v50, %v590_v46 }
 0x116   :  { %721 = vst.msk [vmem:[#allocation7] sm:$0xff] %vm720_vm6, %v716_v51 }
 0x117   :  { %v719_v54 = vsel %vm1149_vm5, %v715_v52, %v690_v49  ;;  %v714_v55 = vmax.f32 %v684_v53, 0.0001 }
 0x118   :  { %724 = vst.msk [vmem:[#allocation7 + $0x18] sm:$0xff] %vm720_vm6, %v719_v54 }
 0x119   :  { %v718_v56 = vsel %vm1149_vm5, %v714_v55, %v684_v53 }
 0x11a   :  { %723 = vst.msk [vmem:[#allocation7 + $0x10] sm:$0xff] %vm720_vm6, %v718_v56 }
 0x11b   :  { %951 = shalt.err (!%p948_p0)
}
 0x11c   :  { %736 = dma.vmem_to_hbm [thread:$0]  %s731_s1, 512, %s1173_s2, [#allocation4], %s967_s12, %s967_s12, %s968_s13  }
 0x11d   :  { %964 = dma.done.wait [#allocation4], 512  }
 0x11e   :  { %965 = vsyncadd [#allocation4], 4294966784 }
 0x11f   :  { %740 = vsyncpa [#allocation3], 1 }
 0x120   :  { %741 = vsyncpa [#allocation6], 1 }
 0x121   :  { %742 = vsyncpa [#allocation4], 1 }

</bundles_post_ra>
